<compile_context>
chip_gen: v6e
topology: v6e:2x2x1
jax: 0.10.0
libtpu: 0.0.40
codegen_flags: <defaults>
</compile_context>

<pallas_src>
import math

import jax
import jax.numpy as jnp
from jax.experimental import pallas as pl
from jax.experimental.pallas import tpu as pltpu

_VMEM_LIMIT = 48 * 1024 * 1024    # < v7x 64 MiB physical VMEM; safe on v5e/v6e too.
_BLOCK_BUDGET = 8 * 1024 * 1024   # per streaming block; scale kernel holds ~4 blocks
                                  # (double-buffered in + out) -> ~32 MiB peak.


# ----------------------------- helpers ---------------------------------------

def _sigmoid(x):
    # Numerically stable logistic: exp never sees a large positive argument.
    e = jnp.exp(-jnp.abs(x))
    return jnp.where(x >= 0, 1.0 / (1.0 + e), e / (1.0 + e))


def _conv_kernel_size(channel, b=1, gamma=2):
    t = int(abs((math.log(channel, 2) + b) / gamma))
    return t if t % 2 else t + 1


def _conv1d_toeplitz(w, C):
    """(C, C) matrix M with conv1d_same(v, w) == v @ M.T, matching
    nn.Conv1d(1, 1, k, padding=k//2, bias=False) (cross-correlation)."""
    k = w.shape[0]
    pad = k // 2
    j = jnp.arange(C)[None, :] - jnp.arange(C)[:, None] + pad  # j[c,c'] = c'-c+pad
    valid = (j >= 0) & (j < k)
    return jnp.where(valid, w[jnp.clip(j, 0, k - 1)], 0.0).astype(jnp.float32)


def _pick_t_tile(HW, C, itemsize, budget=_BLOCK_BUDGET):
    """Lane-dense spatial tile: full H*W if it fits the per-block budget, else
    the largest multiple of 128 under the budget (preferring exact divisors)."""
    if C * HW * itemsize <= budget:
        return HW
    max_t = max(128, (budget // (C * itemsize)) // 128 * 128)
    best_div = 0
    for t in range(128, min(HW, max_t) + 1, 128):
        if HW % t == 0:
            best_div = t
    if best_div:
        return best_div
    # No exact divisor under budget: ragged tail is masked in the gap kernel
    # and the boundary write of the scale kernel is masked by Pallas.
    return min(max_t, pl.cdiv(HW, 128) * 128)


def _pick_c_tile(C, B, itemsize):
    """Channel tile for the scale kernel.  Splitting channels keeps both v7x
    TensorCores busy when B == 1; the tile stays a packed-sublane multiple
    (8 for f32, 16 for bf16, 32 for int8)."""
    if B >= 2:
        return C
    sub = {4: 8, 2: 16, 1: 32}.get(itemsize, 8)
    if C % (2 * sub) == 0:
        return C // 2
    return C


# ----------------------------- Pallas kernels --------------------------------

def _make_gap_attn_kernel(inv_hw, hw, t_tile, ragged):
    """Grid (B, nT): accumulate the global average pool over lane-dense spatial
    tiles; on the last tile, run the whole channel-attention math and emit the
    per-channel attention vector."""

    def kernel(x_ref, convT_ref, fcT_ref, fcb_ref, mixw_ref, attn_ref, acc_ref):
        t = pl.program_id(1)

        @pl.when(t == 0)
        def _():
            acc_ref[...] = jnp.zeros_like(acc_ref)

        xf = x_ref[...].astype(jnp.float32)              # (1, C, T)
        if ragged:
            pos = t * t_tile + jax.lax.broadcasted_iota(jnp.int32, xf.shape, 2)
            xf = jnp.where(pos < hw, xf, 0.0)
        acc_ref[...] += jnp.sum(xf, axis=2)              # lane-dense (1, C)

        @pl.when(t == pl.num_programs(1) - 1)
        def _():
            gap = acc_ref[...] * jnp.float32(inv_hw)                     # (1, C)
            convT = convT_ref[...]                                       # (C, C)
            x1 = jnp.dot(gap, convT, preferred_element_type=jnp.float32)
            x2 = jnp.dot(gap, fcT_ref[...],
                         preferred_element_type=jnp.float32) + fcb_ref[...]
            s1 = jnp.sum(x1, axis=-1, keepdims=True)                     # (1, 1)
            s2 = jnp.sum(x2, axis=-1, keepdims=True)                     # (1, 1)
            out1 = _sigmoid(s1 * x2)
            out2 = _sigmoid(s2 * x1)
            m = _sigmoid(mixw_ref[...])                                  # (1, 1)
            mixed = m * out1 + (1.0 - m) * out2
            attn = _sigmoid(jnp.dot(mixed, convT,
                                    preferred_element_type=jnp.float32))  # (1, C)
            attn_ref[...] = attn[None]                                    # (1, 1, C)

    return kernel


def _scale_kernel(x_ref, a_ref, o_ref):
    # (1, TC, T) * (1, TC, 1) -> broadcast over the flattened spatial axis,
    # computed in the input dtype.
    o_ref[...] = x_ref[...] * a_ref[...]


# ----------------------------- forward wrapper -------------------------------

def dtca_forward(x, conv1_weight, fc_weight, fc_bias, mix_w, *,
                 t_tile=None, donate_input=False):
    """x: (B, C, H, W); conv1_weight: (1,1,k); fc_weight: (C,C,1,1); fc_bias: (C,)."""
    B, C, H, W = x.shape
    HW = H * W
    itemsize = jnp.dtype(x.dtype).itemsize

    T = t_tile if t_tile is not None else _pick_t_tile(HW, C, itemsize)
    nT = pl.cdiv(HW, T)
    ragged = (HW % T) != 0
    inv_hw = 1.0 / float(HW)

    TC = _pick_c_tile(C, B, itemsize)
    nC = C // TC

    x3 = x.reshape(B, C, HW)                       # free: NCHW is contiguous

    # Tiny attention parameters (host-side prep).
    conv_w = conv1_weight.reshape(-1).astype(jnp.float32)          # (k,)
    convT = _conv1d_toeplitz(conv_w, C).T                          # (C, C)
    fcT = fc_weight.reshape(C, C).astype(jnp.float32).T            # (C, C)
    fcb = fc_bias.reshape(1, C).astype(jnp.float32)                # (1, C)
    mix = jnp.asarray(mix_w, jnp.float32).reshape(1, 1)            # (1, 1)

    # ---- kernel 1: global average pool + fused channel-attention epilogue
    attn = pl.pallas_call(
        _make_gap_attn_kernel(inv_hw, HW, T, ragged),
        grid=(B, nT),
        in_specs=[
            pl.BlockSpec((1, C, T), lambda b, t: (b, 0, t)),
            pl.BlockSpec((C, C), lambda b, t: (0, 0)),
            pl.BlockSpec((C, C), lambda b, t: (0, 0)),
            pl.BlockSpec((1, C), lambda b, t: (0, 0)),
            pl.BlockSpec((1, 1), lambda b, t: (0, 0)),
        ],
        out_specs=pl.BlockSpec((1, 1, C), lambda b, t: (b, 0, 0)),
        out_shape=jax.ShapeDtypeStruct((B, 1, C), jnp.float32),
        scratch_shapes=[pltpu.VMEM((1, C), jnp.float32)],
        compiler_params=pltpu.CompilerParams(
            dimension_semantics=("parallel", "arbitrary"),
            vmem_limit_bytes=_VMEM_LIMIT),
    )(x3, convT, fcT, fcb, mix)

    # (B, 1, C) -> (B, C, 1): identical linear order, free metadata reshape;
    # cast once so the streaming multiply runs in the input dtype.
    attn3 = attn.reshape(B, C, 1).astype(x.dtype)

    # ---- kernel 2: per-channel scaling of the full tensor (one read + write)
    out3 = pl.pallas_call(
        _scale_kernel,
        grid=(B, nC, nT),
        in_specs=[
            pl.BlockSpec((1, TC, T), lambda b, c, t: (b, c, t)),
            pl.BlockSpec((1, TC, 1), lambda b, c, t: (b, c, 0)),
        ],
        out_specs=pl.BlockSpec((1, TC, T), lambda b, c, t: (b, c, t)),
        out_shape=jax.ShapeDtypeStruct((B, C, HW), x.dtype),
        compiler_params=pltpu.CompilerParams(
            dimension_semantics=("parallel", "parallel", "parallel"),
            vmem_limit_bytes=_VMEM_LIMIT),
        input_output_aliases=({0: 0} if donate_input else {}),
    )(x3, attn3)

    return out3.reshape(B, C, H, W)


# ----------------------------- pure-JAX reference ----------------------------

def _conv1d_ref(v, w):
    """v: (B, C); w: (k,) — same-padded cross-correlation along channels."""
    k = w.shape[0]
    pad = k // 2
    vp = jnp.pad(v, ((0, 0), (pad, pad)))
    out = jnp.zeros_like(v)
    for j in range(k):
        out = out + w[j] * vp[:, j:j + v.shape[1]]
    return out


def _ref_dtca(x, conv1_weight, fc_weight, fc_bias, mix_w):
    B, C, H, W = x.shape
    xf = x.astype(jnp.float32)
    conv_w = conv1_weight.reshape(-1).astype(jnp.float32)
    gap = jnp.mean(xf, axis=(2, 3))                                  # (B, C)
    x1 = _conv1d_ref(gap, conv_w)                                    # (B, C)
    x2 = gap @ fc_weight.reshape(C, C).astype(jnp.float32).T \
        + fc_bias.astype(jnp.float32)                                # (B, C)
    x1c = x1[:, :, None]                                             # (B, C, 1)
    x2r = x2[:, None, :]                                             # (B, 1, C)
    out1 = jax.nn.sigmoid(jnp.sum(x1c @ x2r, axis=1))                # (B, C)
    out2 = jax.nn.sigmoid(jnp.sum(jnp.swapaxes(x2r, -1, -2)
                                  @ jnp.swapaxes(x1c, -1, -2), axis=1))
    m = jax.nn.sigmoid(jnp.asarray(mix_w, jnp.float32))
    mixed = m * out1 + (1.0 - m) * out2
    attn = jax.nn.sigmoid(_conv1d_ref(mixed, conv_w))
    return (xf * attn[:, :, None, None]).astype(x.dtype)


# ----------------------------- demo / self-check ------------------------------

def _run_case(key, B, C, H, W):
    k = _conv_kernel_size(C)
    k1, k2, k3, k4 = jax.random.split(key, 4)
    x = jax.random.normal(k1, (B, C, H, W), dtype=jnp.float32)
    conv1_weight = jax.random.normal(k2, (1, 1, k), dtype=jnp.float32) * 0.5
    fc_weight = jax.random.normal(k3, (C, C, 1, 1), dtype=jnp.float32) / jnp.sqrt(C)
    fc_bias = jax.random.normal(k4, (C,), dtype=jnp.float32) * 0.1
    mix_w = jnp.asarray(-0.8, dtype=jnp.float32)

    y = dtca_forward(x, conv1_weight, fc_weight, fc_bias, mix_w)
    y = jax.block_until_ready(y)
    y_ref = _ref_dtca(x, conv1_weight, fc_weight, fc_bias, mix_w)

    ok = (y.shape == (B, C, H, W)) and bool(
        jnp.allclose(y, y_ref, atol=1e-4, rtol=1e-4))
    err = float(jnp.max(jnp.abs(y - y_ref)))
    return ok, err


if __name__ == "__main__":
    key = jax.random.PRNGKey(0)
    ka, kb = jax.random.split(key)

    ok1, err1 = _run_case(ka, B=2, C=16, H=16, W=16)   # batch-parallel path
    ok2, err2 = _run_case(kb, B=1, C=16, H=8, W=16)    # channel-split path (B=1)

    if ok1 and ok2:
        print("KERNEL_OK")
    else:
        print("KERNEL_MISMATCH max_abs_err=", max(err1, err2))
</pallas_src>

<mosaic_0001>
module attributes {stable_mosaic.version = 11 : i64} {
  func.func @kernel(%arg0: i32, %arg1: i32, %arg2: memref<1x16x256xf32, #tpu.memory_space<vmem>>, %arg3: memref<16x16xf32, #tpu.memory_space<vmem>>, %arg4: memref<16x16xf32, #tpu.memory_space<vmem>>, %arg5: memref<1x16xf32, #tpu.memory_space<vmem>>, %arg6: memref<1x1xf32, #tpu.memory_space<vmem>>, %arg7: memref<1x1x16xf32, #tpu.memory_space<vmem>>, %arg8: memref<1x16xf32, #tpu.memory_space<vmem>>) attributes {dimension_semantics = [#tpu.dimension_semantics<parallel>, #tpu.dimension_semantics<arbitrary>], iteration_bounds = array<i64: 2, 1>, scalar_prefetch = 0 : i64, scratch_operands = 1 : i64, tpu.core_type = #tpu.core_type<tc>, window_params = [{transform_indices = @transform_0, window_bounds = array<i64: 1, 16, 256>}, {pipeline_mode = #tpu.pipeline_mode<synchronous>, transform_indices = @transform_1, window_bounds = array<i64: 16, 16>}, {pipeline_mode = #tpu.pipeline_mode<synchronous>, transform_indices = @transform_2, window_bounds = array<i64: 16, 16>}, {pipeline_mode = #tpu.pipeline_mode<synchronous>, transform_indices = @transform_3, window_bounds = array<i64: 1, 16>}, {pipeline_mode = #tpu.pipeline_mode<synchronous>, transform_indices = @transform_4, window_bounds = array<i64: 1, 1>}, {transform_indices = @transform_5, window_bounds = array<i64: 1, 1, 16>}]} {
    %c0_i32 = arith.constant 0 : i32
    %0 = arith.cmpi eq, %arg1, %c0_i32 : i32
    %1 = arith.extui %0 : i1 to i32
    %c0_i32_0 = arith.constant 0 : i32
    %2 = arith.cmpi ne, %1, %c0_i32_0 : i32
    scf.if %2 {
      %cst_9 = arith.constant 0.000000e+00 : f32
      %11 = vector.broadcast %cst_9 : f32 to vector<1x16xf32>
      %c0_10 = arith.constant 0 : index
      %c0_11 = arith.constant 0 : index
      %12 = vector.load %arg8[%c0_10, %c0_11] : memref<1x16xf32, #tpu.memory_space<vmem>>, vector<1x16xf32>
      tpu.vector_store %arg8[%c0_10, %c0_11], %11 {strides = array<i32>} : memref<1x16xf32, #tpu.memory_space<vmem>>, vector<1x16xf32>,
    } else {
    }
    %c0 = arith.constant 0 : index
    %c0_1 = arith.constant 0 : index
    %c0_2 = arith.constant 0 : index
    %3 = vector.load %arg2[%c0, %c0_1, %c0_2] : memref<1x16x256xf32, #tpu.memory_space<vmem>>, vector<1x16x256xf32>
    %c0_3 = arith.constant 0 : index
    %c0_4 = arith.constant 0 : index
    %4 = vector.load %arg8[%c0_3, %c0_4] : memref<1x16xf32, #tpu.memory_space<vmem>>, vector<1x16xf32>
    %cst = arith.constant dense<0.000000e+00> : vector<1x16xf32>
    %5 = vector.multi_reduction <add>, %3, %cst [2] : vector<1x16x256xf32> to vector<1x16xf32>
    %6 = arith.addf %4, %5 : vector<1x16xf32>
    %c0_5 = arith.constant 0 : index
    %c0_6 = arith.constant 0 : index
    %7 = vector.load %arg8[%c0_5, %c0_6] : memref<1x16xf32, #tpu.memory_space<vmem>>, vector<1x16xf32>
    tpu.vector_store %arg8[%c0_5, %c0_6], %6 {strides = array<i32>} : memref<1x16xf32, #tpu.memory_space<vmem>>, vector<1x16xf32>,
    %c0_i32_7 = arith.constant 0 : i32
    %8 = arith.cmpi eq, %arg1, %c0_i32_7 : i32
    %9 = arith.extui %8 : i1 to i32
    %c0_i32_8 = arith.constant 0 : i32
    %10 = arith.cmpi ne, %9, %c0_i32_8 : i32
    scf.if %10 {
      %c0_9 = arith.constant 0 : index
      %c0_10 = arith.constant 0 : index
      %11 = vector.load %arg8[%c0_9, %c0_10] : memref<1x16xf32, #tpu.memory_space<vmem>>, vector<1x16xf32>
      %cst_11 = arith.constant 3.906250e-03 : f32
      %12 = vector.broadcast %cst_11 : f32 to vector<1x16xf32>
      %13 = arith.mulf %11, %12 : vector<1x16xf32>
      %c0_12 = arith.constant 0 : index
      %c0_13 = arith.constant 0 : index
      %14 = vector.load %arg3[%c0_12, %c0_13] : memref<16x16xf32, #tpu.memory_space<vmem>>, vector<16x16xf32>
      %cst_14 = arith.constant dense<0.000000e+00> : vector<1x16xf32>
      %15 = tpu.matmul %13, %14, %cst_14 {dimension_numbers = #tpu.dot_dimension_numbers<[1], [0], [0], [1], [0, 0, 1, 1], [], []>} : vector<1x16xf32>, vector<16x16xf32>, vector<1x16xf32> -> vector<1x16xf32>
      %c0_15 = arith.constant 0 : index
      %c0_16 = arith.constant 0 : index
      %16 = vector.load %arg4[%c0_15, %c0_16] : memref<16x16xf32, #tpu.memory_space<vmem>>, vector<16x16xf32>
      %cst_17 = arith.constant dense<0.000000e+00> : vector<1x16xf32>
      %17 = tpu.matmul %13, %16, %cst_17 {dimension_numbers = #tpu.dot_dimension_numbers<[1], [0], [0], [1], [0, 0, 1, 1], [], []>} : vector<1x16xf32>, vector<16x16xf32>, vector<1x16xf32> -> vector<1x16xf32>
      %c0_18 = arith.constant 0 : index
      %c0_19 = arith.constant 0 : index
      %18 = vector.load %arg5[%c0_18, %c0_19] : memref<1x16xf32, #tpu.memory_space<vmem>>, vector<1x16xf32>
      %19 = arith.addf %17, %18 : vector<1x16xf32>
      %cst_20 = arith.constant dense<0.000000e+00> : vector<1xf32>
      %20 = vector.multi_reduction <add>, %15, %cst_20 [1] : vector<1x16xf32> to vector<1xf32>
      %21 = vector.shape_cast %20 : vector<1xf32> to vector<1x1xf32>
      %cst_21 = arith.constant dense<0.000000e+00> : vector<1xf32>
      %22 = vector.multi_reduction <add>, %19, %cst_21 [1] : vector<1x16xf32> to vector<1xf32>
      %23 = vector.shape_cast %22 : vector<1xf32> to vector<1x1xf32>
      %24 = vector.broadcast %21 : vector<1x1xf32> to vector<1x16xf32>
      %25 = arith.mulf %24, %19 : vector<1x16xf32>
      %26 = math.absf %25 : vector<1x16xf32>
      %cst_22 = arith.constant 0.000000e+00 : f32
      %27 = vector.broadcast %cst_22 : f32 to vector<1x16xf32>
      %28 = arith.subf %27, %26 : vector<1x16xf32>
      %29 = math.exp %28 : vector<1x16xf32>
      %cst_23 = arith.constant 0.000000e+00 : f32
      %30 = vector.broadcast %cst_23 : f32 to vector<1x16xf32>
      %31 = arith.cmpf oge, %25, %30 : vector<1x16xf32>
      %cst_24 = arith.constant 1.000000e+00 : f32
      %32 = vector.broadcast %cst_24 : f32 to vector<1x16xf32>
      %33 = arith.addf %32, %29 : vector<1x16xf32>
      %cst_25 = arith.constant 1.000000e+00 : f32
      %34 = vector.broadcast %cst_25 : f32 to vector<1x16xf32>
      %35 = arith.divf %34, %33 : vector<1x16xf32>
      %cst_26 = arith.constant 1.000000e+00 : f32
      %36 = vector.broadcast %cst_26 : f32 to vector<1x16xf32>
      %37 = arith.addf %36, %29 : vector<1x16xf32>
      %38 = arith.divf %29, %37 : vector<1x16xf32>
      %39 = arith.select %31, %35, %38 : vector<1x16xi1>, vector<1x16xf32>
      %40 = vector.broadcast %23 : vector<1x1xf32> to vector<1x16xf32>
      %41 = arith.mulf %40, %15 : vector<1x16xf32>
      %42 = math.absf %41 : vector<1x16xf32>
      %cst_27 = arith.constant 0.000000e+00 : f32
      %43 = vector.broadcast %cst_27 : f32 to vector<1x16xf32>
      %44 = arith.subf %43, %42 : vector<1x16xf32>
      %45 = math.exp %44 : vector<1x16xf32>
      %cst_28 = arith.constant 0.000000e+00 : f32
      %46 = vector.broadcast %cst_28 : f32 to vector<1x16xf32>
      %47 = arith.cmpf oge, %41, %46 : vector<1x16xf32>
      %cst_29 = arith.constant 1.000000e+00 : f32
      %48 = vector.broadcast %cst_29 : f32 to vector<1x16xf32>
      %49 = arith.addf %48, %45 : vector<1x16xf32>
      %cst_30 = arith.constant 1.000000e+00 : f32
      %50 = vector.broadcast %cst_30 : f32 to vector<1x16xf32>
      %51 = arith.divf %50, %49 : vector<1x16xf32>
      %cst_31 = arith.constant 1.000000e+00 : f32
      %52 = vector.broadcast %cst_31 : f32 to vector<1x16xf32>
      %53 = arith.addf %52, %45 : vector<1x16xf32>
      %54 = arith.divf %45, %53 : vector<1x16xf32>
      %55 = arith.select %47, %51, %54 : vector<1x16xi1>, vector<1x16xf32>
      %c0_32 = arith.constant 0 : index
      %c0_33 = arith.constant 0 : index
      %56 = vector.load %arg6[%c0_32, %c0_33] : memref<1x1xf32, #tpu.memory_space<vmem>>, vector<1x1xf32>
      %57 = math.absf %56 : vector<1x1xf32>
      %cst_34 = arith.constant 0.000000e+00 : f32
      %58 = vector.broadcast %cst_34 : f32 to vector<1x1xf32>
      %59 = arith.subf %58, %57 : vector<1x1xf32>
      %60 = math.exp %59 : vector<1x1xf32>
      %cst_35 = arith.constant 0.000000e+00 : f32
      %61 = vector.broadcast %cst_35 : f32 to vector<1x1xf32>
      %62 = arith.cmpf oge, %56, %61 : vector<1x1xf32>
      %cst_36 = arith.constant 1.000000e+00 : f32
      %63 = vector.broadcast %cst_36 : f32 to vector<1x1xf32>
      %64 = arith.addf %63, %60 : vector<1x1xf32>
      %cst_37 = arith.constant 1.000000e+00 : f32
      %65 = vector.broadcast %cst_37 : f32 to vector<1x1xf32>
      %66 = arith.divf %65, %64 : vector<1x1xf32>
      %cst_38 = arith.constant 1.000000e+00 : f32
      %67 = vector.broadcast %cst_38 : f32 to vector<1x1xf32>
      %68 = arith.addf %67, %60 : vector<1x1xf32>
      %69 = arith.divf %60, %68 : vector<1x1xf32>
      %70 = arith.select %62, %66, %69 : vector<1x1xi1>, vector<1x1xf32>
      %71 = vector.broadcast %70 : vector<1x1xf32> to vector<1x16xf32>
      %72 = arith.mulf %71, %39 : vector<1x16xf32>
      %cst_39 = arith.constant 1.000000e+00 : f32
      %73 = vector.broadcast %cst_39 : f32 to vector<1x1xf32>
      %74 = arith.subf %73, %70 : vector<1x1xf32>
      %75 = vector.broadcast %74 : vector<1x1xf32> to vector<1x16xf32>
      %76 = arith.mulf %75, %55 : vector<1x16xf32>
      %77 = arith.addf %72, %76 : vector<1x16xf32>
      %cst_40 = arith.constant dense<0.000000e+00> : vector<1x16xf32>
      %78 = tpu.matmul %77, %14, %cst_40 {dimension_numbers = #tpu.dot_dimension_numbers<[1], [0], [0], [1], [0, 0, 1, 1], [], []>} : vector<1x16xf32>, vector<16x16xf32>, vector<1x16xf32> -> vector<1x16xf32>
      %79 = math.absf %78 : vector<1x16xf32>
      %cst_41 = arith.constant 0.000000e+00 : f32
      %80 = vector.broadcast %cst_41 : f32 to vector<1x16xf32>
      %81 = arith.subf %80, %79 : vector<1x16xf32>
      %82 = math.exp %81 : vector<1x16xf32>
      %cst_42 = arith.constant 0.000000e+00 : f32
      %83 = vector.broadcast %cst_42 : f32 to vector<1x16xf32>
      %84 = arith.cmpf oge, %78, %83 : vector<1x16xf32>
      %cst_43 = arith.constant 1.000000e+00 : f32
      %85 = vector.broadcast %cst_43 : f32 to vector<1x16xf32>
      %86 = arith.addf %85, %82 : vector<1x16xf32>
      %cst_44 = arith.constant 1.000000e+00 : f32
      %87 = vector.broadcast %cst_44 : f32 to vector<1x16xf32>
      %88 = arith.divf %87, %86 : vector<1x16xf32>
      %cst_45 = arith.constant 1.000000e+00 : f32
      %89 = vector.broadcast %cst_45 : f32 to vector<1x16xf32>
      %90 = arith.addf %89, %82 : vector<1x16xf32>
      %91 = arith.divf %82, %90 : vector<1x16xf32>
      %92 = arith.select %84, %88, %91 : vector<1x16xi1>, vector<1x16xf32>
      %93 = vector.shape_cast %92 : vector<1x16xf32> to vector<1x1x16xf32>
      %c0_46 = arith.constant 0 : index
      %c0_47 = arith.constant 0 : index
      %c0_48 = arith.constant 0 : index
      %94 = vector.load %arg7[%c0_46, %c0_47, %c0_48] : memref<1x1x16xf32, #tpu.memory_space<vmem>>, vector<1x1x16xf32>
      tpu.vector_store %arg7[%c0_46, %c0_47, %c0_48], %93 {strides = array<i32>} : memref<1x1x16xf32, #tpu.memory_space<vmem>>, vector<1x1x16xf32>,
    } else {
    }
    return
  }
  func.func @transform_0(%arg0: i32, %arg1: i32) -> (i32, i32, i32) {
    %c0_i32 = arith.constant 0 : i32
    %c0_i32_0 = arith.constant 0 : i32
    return %arg0, %c0_i32, %arg1 : i32, i32, i32
  }
  func.func @transform_1(%arg0: i32, %arg1: i32) -> (i32, i32) {
    %c0_i32 = arith.constant 0 : i32
    %c0_i32_0 = arith.constant 0 : i32
    %c0_i32_1 = arith.constant 0 : i32
    return %c0_i32, %c0_i32_0 : i32, i32
  }
  func.func @transform_2(%arg0: i32, %arg1: i32) -> (i32, i32) {
    %c0_i32 = arith.constant 0 : i32
    %c0_i32_0 = arith.constant 0 : i32
    %c0_i32_1 = arith.constant 0 : i32
    return %c0_i32, %c0_i32_0 : i32, i32
  }
  func.func @transform_3(%arg0: i32, %arg1: i32) -> (i32, i32) {
    %c0_i32 = arith.constant 0 : i32
    %c0_i32_0 = arith.constant 0 : i32
    %c0_i32_1 = arith.constant 0 : i32
    return %c0_i32, %c0_i32_0 : i32, i32
  }
  func.func @transform_4(%arg0: i32, %arg1: i32) -> (i32, i32) {
    %c0_i32 = arith.constant 0 : i32
    %c0_i32_0 = arith.constant 0 : i32
    %c0_i32_1 = arith.constant 0 : i32
    return %c0_i32, %c0_i32_0 : i32, i32
  }
  func.func @transform_5(%arg0: i32, %arg1: i32) -> (i32, i32, i32) {
    %c0_i32 = arith.constant 0 : i32
    %c0_i32_0 = arith.constant 0 : i32
    %c0_i32_1 = arith.constant 0 : i32
    return %arg0, %c0_i32, %c0_i32_0 : i32, i32, i32
  }
}

</mosaic_0001>

<bundles_post_ra>
// kernel: tpu_custom_call.1
= control target key start
LH: loop header
LB: loop body
LE: loop exit
PB: predicated region body
PF: predicated region fallthrough
CT: control target
= control target key end

     0   :  { %s1518_s0 = inlined_call_operand.hbm [shape: f32[2,16,256], index: 0, kind: input, shape index: {}]   ;;  %s1519_s1 = inlined_call_operand.hbm [shape: f32[16,16], index: 1, kind: input, shape index: {}]   ;;  %s1520_s2 = inlined_call_operand.hbm [shape: f32[16,16], index: 2, kind: input, shape index: {}]   ;;  %s1521_s3 = inlined_call_operand.vmem [shape: f32[1,16], index: 3, kind: input, shape index: {}]   ;;  %s1522_s4 = inlined_call_operand.<no memory space> [shape: f32[1,1], index: 4, kind: input, shape index: {}]   ;;  %s1523_s5 = inlined_call_operand.hbm [shape: f32[2,1,16], index: 5, kind: output, shape index: {}]  }
   0x1   :  { %v10_v0 = vstv %s1522_s4 }
   0x2   :  { %11 = vst [vmem:[#allocation3] sm:$0x1] %v10_v0 }
   0x3   :  { %12 = vsyncpa [#allocation5], 0 }
   0x4   :  { %14 = vsyncpa [#allocation5 + $0x1], 0 }
   0x5   :  { %15 = vsyncpa [#allocation8], 0 }
   0x6   :  { %16 = vsyncpa [#allocation6], 0 }
   0x7   :  { %18 = vsyncpa [#allocation6 + $0x1], 0  ;;  %s1286_s20 = smov 0   ;;  %s1288_s21 = smov 0  }
   0x8   :  { %s1290_s22 = smov 0   ;;  %s1292_s23 = smov 0  }
   0x9   :  { %s1294_s24 = smov 0   ;;  %s1296_s25 = smov 0  }
   0xa LB: > { %s916_s4 = sadd.s32 4294967295, %s1239_s25   ;;  %s917_s26 = sadd.s32 4294967294, %s1239_s25   ;;  %s1239_s25 = sphi %s1296_s25, %s24_s25   ;;  %s1235_s24 = sphi %s1294_s24, %s1543_s24   ;;  %s1231_s23 = sphi %s1292_s23, %s1542_s23   ;;  %s1227_s22 = sphi %s1290_s22, %s1541_s22   ;;  %s1223_s21 = sphi %s1288_s21, %s1540_s21   ;;  %s1219_s20 = sphi %s1286_s20, %s1539_s20  }
   0xb   : > { %p58_p0 = scmp.ne.s32.totalorder %s1223_s21, %s1219_s20  ;;  %p1320_p1 = scmp.eq.s32.totalorder %s916_s4, 0 }
   0xc   : > { %p1324_p2 = scmp.eq.s32.totalorder %s916_s4, 1  ;;  %p172_p3 = scmp.eq.s32.totalorder %s917_s26, 1 }
   0xd   : > { %s1527_s27 = scalar_select %p1320_p1, 1, 0 }
   0xe   : > { %p1330_p4 = por %p1320_p1, %p58_p0  ;;  %p918_p5 = scmp.ge.s32.totalorder %s1239_s25, 1 }
   0xf   : > { %p1335_p6 = por %p172_p3, %p58_p0  ;;  %p179_p7 = scmp.lt.s32.totalorder %s1239_s25, 3 }
  0x10   : > { %s1529_s29 = scalar_select %p1330_p4, 1, 0 }
  0x11   : > { %s1530_s30 = scalar_select %p1335_p6, 1, 0 }
  0x12   : > { %p1340_p8 = pnand %p918_p5, %p179_p7  ;;  %s1241_s7 = smov [#allocation7]  }
  0x13   : > { %s191_s8 = sshll.u32 %s1241_s7, 4  ;;  %s1242_s10 = smov [#allocation9]   ;;  %s192_s8 = int_to_ptr.vmem [resolvable:$true] %s191_s8 }
  0x14   : > { %p978_p9 = pneg %p1340_p8  ;;  %s204_s11 = sshll.u32 %s1242_s10, 4  ;;  %s205_s11 = int_to_ptr.vmem [resolvable:$true] %s204_s11 }
  0x15   : > { %s1086_s12 = scalar_lea.vmem %s192_s8, 256  ;;  %p1094_p5 = scmp.lt.s32.totalorder %s192_s8, %s192_s8 }
  0x16   : > { %p1349_p11 = pnand %p978_p9, %p1320_p1  ;;  %p1087_p13 = scmp.ne.s32.totalorder %s192_s8, %s1086_s12 }
  0x17   : > { %p1095_p7 = scmp.lt.s32.totalorder %s1086_s12, %s1086_s12 }
  0x18   : > { %p1077_p12 = pneg %p1349_p11 }
  0x19   : > { %p1096_p10 = por %p1095_p7, %p1094_p5 }
  0x1a   : > { %p1089_p0 = pnand %p1087_p13, %p1077_p12 }
  0x1c   : > { %p1090_p3 = pneg %p1089_p0 }
  0x1e   : > { %p1097_p9 = pnand %p1096_p10, %p1090_p3 }
  0x20   : > { %1100 = shalt.err (!%p1097_p9)
}
  0x21   : > { %s1243_s13 = smov 128   ;;  %s1244_s14 = smov 8  }
  0x22   : > { %981 = dma.hbm_to_vmem [thread:$0]  (!%p1349_p11), %s1519_s1, 256, %s192_s8, [#allocation8], %s1243_s13, %s1243_s13, %s1244_s14  }
  0x23   : > { %s1112_s17 = scalar_lea.vmem %s205_s11, 256  ;;  %p1120_p1 = scmp.lt.s32.totalorder %s205_s11, %s205_s11 }
  0x24   : > { %p1113_p6 = scmp.ne.s32.totalorder %s205_s11, %s1112_s17  ;;  %p1121_p4 = scmp.lt.s32.totalorder %s1112_s17, %s1112_s17 }
  0x26   : > { %p1115_p13 = pnand %p1113_p6, %p1077_p12  ;;  %p1122_p5 = por %p1121_p4, %p1120_p1 }
  0x28   : > { %p1116_p0 = pneg %p1115_p13 }
  0x2a   : > { %p1123_p10 = pnand %p1122_p5, %p1116_p0 }
  0x2c   : > { %1126 = shalt.err (!%p1123_p10)
}
  0x2d   : > { %984 = dma.hbm_to_vmem [thread:$0]  (!%p1349_p11), %s1520_s2, 256, %s205_s11, [#allocation8], %s1243_s13, %s1243_s13, %s1244_s14  }
  0x2e   : > { %s36_s4 = sadd.s32 1, %s1235_s24  ;;  %s45_s26 = sadd.s32 1, %s1227_s22 }
  0x2f   : > { %p38_p1 = scmp.ge.s32.totalorder %s36_s4, 2  ;;  %p52_p4 = scmp.ne.s32.totalorder %s1227_s22, %s1223_s21 }
  0x30   : > { %p53_p6 = scmp.eq.s32.totalorder %s1239_s25, 0  ;;  %p995_p12 = scmp.lt.s32.totalorder %s1239_s25, 2 }
  0x31   : > { %s1545_s4 = smov (%p38_p1, %s36_s4), 0  ;;  %p1381_p7 = por %p1324_p2, %p52_p4 }
  0x32   : > { %p54_p3 = por %p53_p6, %p52_p4  ;;  %s40_s8 = ssub.s32 %s1235_s24, %s1545_s4 }
  0x33   : > { %s224_s9 = sand.u32 1, %s1227_s22   ;;  %p43_p9 = scmp.eq.s32.totalorder %s40_s8, 0 }
  0x34   : > { %s922_s10 = sshll.u32 %s224_s9, 5  ;;  %s935_s11 = sshll.u32 %s1235_s24, 9 }
  0x35   : > { %s1390_s12 = scalar_select %p43_p9, %s1227_s22, %s45_s26  }
  0x36   : > { %s236_s15 = scalar_lea.hbm %s1518_s0, %s935_s11  ;;  %s228_s16 = scalar_lea.vmem [#allocation4], %s922_s10 }
  0x37   : > { %s237_s17 = sshll.u32 %s228_s16, 4  ;;  %p1397_p11 = pnand %p995_p12, %p54_p3  ;;  %s238_s17 = int_to_ptr.vmem [resolvable:$true] %s237_s17 }
  0x38   : > { %s225_s18 = scalar_lea.sflag [#allocation5], %s224_s9  ;;  %s1140_s19 = scalar_lea.vmem %s238_s17, 512 }
  0x39   : > { %p1129_p2 = pneg %p1397_p11  ;;  %p1141_p13 = scmp.ne.s32.totalorder %s238_s17, %s1140_s19 }
  0x3a   : > { %s1245_s26 = smov [#allocation4]  }
  0x3b   : > { %p1143_p0 = pnand %p1141_p13, %p1129_p2  ;;  %s1145_s8 = sshll.u32 %s1245_s26, 4  ;;  %s1146_s8 = int_to_ptr.vmem [resolvable:$false] %s1145_s8 }
  0x3c   : > { %s1147_s11 = scalar_lea.vmem %s1146_s8, 1024  ;;  %p1148_p10 = scmp.lt.s32.totalorder %s238_s17, %s1146_s8 }
  0x3d   : > { %p1144_p5 = pneg %p1143_p0  ;;  %p1149_p1 = scmp.lt.s32.totalorder %s1147_s11, %s1140_s19 }
  0x3f   : > { %p1150_p4 = por %p1149_p1, %p1148_p10 }
  0x41   : > { %p1151_p6 = pnand %p1150_p4, %p1144_p5 }
  0x43   : > { %1154 = shalt.err (!%p1151_p6)
}
  0x44   : > { %s1246_s10 = smov 256   ;;  %s1247_s13 = smov 16  }
  0x45   : > { %988 = dma.hbm_to_vmem [thread:$0]  (!%p1397_p11), %s236_s15, 512, %s238_s17, %s225_s18, %s1246_s10, %s1246_s10, %s1247_s13  }
  0x46   : > { %249 = sbr.rel (%p1340_p8) target bundleno = 1006 (0x3ee), region = 40  ;;  %s1408_s9 = sand.u32 (!%p1340_p8), 1, %s1223_s21  }
  0x47   : > { %s926_s14 = sshll.u32 (!%p1340_p8), %s1408_s9, 5  ;;  %s252_s16 = scalar_lea.sflag (!%p1340_p8), [#allocation5], %s1408_s9 }
  0x48   : > { %s255_s19 = scalar_lea.vmem (!%p1340_p8), [#allocation4], %s926_s14  ;;  %p1535_p12 = scmp.ne.s32.totalorder (!%p1340_p8), %s1529_s29, 0 }
  0x4b   : > { %1206 = dma.done.wait (%p1535_p12), %s252_s16, 512  }
  0x4c   : > { %1208 = vsyncadd (%p1535_p12), %s252_s16, 4294966784  ;;  %p1536_p3 = scmp.ne.s32.totalorder %s1527_s27, 0 }
  0x4e   : > { %1210 = dma.done.wait (%p1536_p3), [#allocation8], 512  }
  0x4f   : > { %1212 = vsyncadd (%p1536_p3), [#allocation8], 4294966784  ;;  %v296_v1 = vld [vmem:[%s255_s19] sm:$0xff]  ;;  %v297_v2 = vld [vmem:[%s255_s19 + $0x8] sm:$0xff]  ;;  %v1248_v7 = vmov 0   ;;  %v309_v8 = vlaneseq  ;;  %vm294_vm0 = vcmask 122880  }
  0x50   : > { %v298_v3 = vld [vmem:[%s255_s19 + $0x10] sm:$0xff]  ;;  %v301_v4 = vadd.f32 %v297_v2, %v296_v1  ;;  %v299_v5 = vld [vmem:[%s255_s19 + $0x18] sm:$0xff]  ;;  %1057 = vset.pattern.permute.xlu1 %v1248_v7  ;;  %1058 = vset.pattern.permute.xlu0 %v1248_v7  ;;  %v1249_v9 = vmov 1966171168   ;;  %v1250_v62 = vmov 0.0   ;;  %vm1251_vm1 = vmmov 0  }
  0x51   : > { %v304_v6 = vadd.f32 %v299_v5, %v298_v3  ;;  %v378_v10 = vunpack.c.l.s4 %v1249_v9  ;;  %v1421_v11 = vshrl.u32 %v309_v8, 7  ;;  %295 = vst.msk [vmem:[#allocation2] sm:$0x1] %vm294_vm0, %v1250_v62  ;;  %945 = vmatprep.subr.mxu0 %v1250_v62  ;;  %952 = vmatprep.subr.mxu1 %v1250_v62  ;;  %v514_v3 = vld [vmem:[#allocation7 + $0x8] sm:$0xff]  ;;  %v513_v5 = vld [vmem:[#allocation7] sm:$0xff]  ;;  %v478_v7 = vand.u32 127, %v309_v8 }
  0x52   : > { %302 = vadd.xlane.f32.xlu0 %v301_v4  ;;  %v590_v4 = vld [vmem:[#allocation9 + $0x8] sm:$0xff]  ;;  %946 = vmatpush3.msra.mxu0 %v514_v3  ;;  %vm488_vm2 = vcmask 130112   ;;  %vm515_vm3 = vcmask 130048   ;;  %s932_s6 = sshll.u32 %s1231_s23, 4  ;;  %s288_s15 = scalar_lea.vmem [#allocation10], %s1408_s9 }
  0x53   : > { %v379_v12 = vunpack.c.0.s8 %v378_v10  ;;  %v1424_v13 = vsub.s32 0, %v1421_v11  ;;  %v315_v14 = vsub.s32 1, %v1421_v11  ;;  %v319_v15 = vsub.s32 2, %v1421_v11  ;;  %953 = vmatpush3.msra.mxu1 %v590_v4  ;;  %947 = vmatprep.subr.mxu0 %v1250_v62  ;;  %s820_s17 = sshll.u32 %s288_s15, 4  ;;  %s1475_s26 = scalar_lea.hbm %s1523_s5, %s932_s6  ;;  %s821_s17 = int_to_ptr.vmem [resolvable:$true] %s820_s17 }
  0x54   : > { %v323_v16 = vsub.s32 3, %v1421_v11  ;;  %v327_v17 = vsub.s32 4, %v1421_v11  ;;  %v331_v18 = vsub.s32 5, %v1421_v11  ;;  %v335_v19 = vsub.s32 6, %v1421_v11  ;;  %954 = vmatprep.subr.mxu1 %v1250_v62  ;;  %948 = vmatpush3.msra.mxu0 %v513_v5  ;;  %s808_s8 = scalar_lea.sflag [#allocation6], %s1408_s9  ;;  %s1155_s11 = scalar_lea.vmem %s821_s17, 16 }
  0x55   : > { %v339_v20 = vsub.s32 7, %v1421_v11  ;;  %v1434_v22 = vsub.s32 %v379_v12, %v1421_v11  ;;  %949 = vmatprep.mubr.msk.f32.mxu0 %vm1251_vm1, %v1250_v62  ;;  %956 = vmatprep.mubr.msk.f32.mxu1 %vm1251_vm1, %v1250_v62  ;;  %v483_v9 = vadd.s32 4294967288, %v478_v7  ;;  %v481_v12 = vsub.s32 %v478_v7, %v1421_v11  ;;  %p1156_p8 = scmp.ne.s32.totalorder %s821_s17, %s1155_s11  ;;  %s1252_s23 = smov [#allocation10]  }
  0x56   : > { %305 = vadd.xlane.f32.xlu0 %v304_v6  ;;  %v589_v6 = vld [vmem:[#allocation9] sm:$0xff]  ;;  %959 = vmatprep.subr.mxu0 %v1250_v62  ;;  %s1159_s10 = sshll.u32 %s1252_s23, 4  ;;  %s1160_s10 = int_to_ptr.vmem [resolvable:$false] %s1159_s10 }
  0x57   : > { %955 = vmatpush3.msra.mxu1 %v589_v6  ;;  %p1157_p9 = pnand %p1156_p8, %p1381_p7  ;;  %s1161_s13 = scalar_lea.vmem %s1160_s10, 32 }
  0x58   : > { %p1162_p2 = scmp.lt.s32.totalorder %s821_s17, %s1160_s10  ;;  %p1163_p13 = scmp.lt.s32.totalorder %s1161_s13, %s1155_s11 }
  0x59   : > { %p1158_p11 = pneg %p1157_p9 }
  0x5a   : > { %p1164_p0 = por %p1163_p13, %p1162_p2 }
  0x5c   : > { %p1165_p5 = pnand %p1164_p0, %p1158_p11 }
  0xdb   : > { %v303_v21 = vpop.xlane.xlu0 %302 }
  0xdc   : > { %v312_v23 = vrot.slane %v303_v21, %v1424_v13  ;;  %v316_v24 = vrot.slane %v303_v21, %v315_v14  ;;  %v320_v25 = vrot.slane %v303_v21, %v319_v15  ;;  %v324_v26 = vrot.slane %v303_v21, %v323_v16 }
  0xdd   : > { %v328_v27 = vrot.slane %v303_v21, %v327_v17  ;;  %v332_v28 = vrot.slane %v303_v21, %v331_v18  ;;  %v336_v29 = vrot.slane %v303_v21, %v335_v19  ;;  %v340_v30 = vrot.slane %v303_v21, %v339_v20 }
  0xde   : > { %v373_v31 = vcombine.low %v312_v23, %v316_v24  ;;  %v374_v32 = vcombine.low %v320_v25, %v324_v26 }
  0xdf   : > { %v306_v33 = vpop.xlane.xlu0 %305  ;;  %v375_v34 = vcombine.low %v328_v27, %v332_v28  ;;  %v376_v35 = vcombine.low %v336_v29, %v340_v30  ;;  %v591_v29 = vld [vmem:[%s1521_s3] sm:$0x1] }
  0xe0   : > { %v383_v36 = vrot.slane %v373_v31, %v1434_v22  ;;  %v390_v37 = vrot.slane %v374_v32, %v1434_v22  ;;  %v344_v38 = vrot.slane %v306_v33, %v1424_v13  ;;  %v348_v39 = vrot.slane %v306_v33, %v315_v14 }
  0xe1   : > { %v397_v40 = vrot.slane %v375_v34, %v1434_v22  ;;  %v404_v41 = vrot.slane %v376_v35, %v1434_v22  ;;  %v352_v42 = vrot.slane %v306_v33, %v319_v15  ;;  %v356_v43 = vrot.slane %v306_v33, %v323_v16 }
  0xe2   : > { %v405_v44 = vcombine.low %v383_v36, %v390_v37  ;;  %v360_v45 = vrot.slane %v306_v33, %v327_v17  ;;  %v364_v46 = vrot.slane %v306_v33, %v331_v18  ;;  %v368_v47 = vrot.slane %v306_v33, %v335_v19 }
  0xe3   : > { %v406_v48 = vcombine.low %v397_v40, %v404_v41  ;;  %v372_v49 = vrot.slane %v306_v33, %v339_v20  ;;  %v422_v50 = vcombine.low %v344_v38, %v348_v39  ;;  %v423_v51 = vcombine.low %v352_v42, %v356_v43  ;;  %v300_v20 = vld [vmem:[#allocation2] sm:$0x1] }
  0xe4   : > { %v413_v52 = vrot.slane %v405_v44, %v1434_v22  ;;  %v424_v53 = vcombine.low %v360_v45, %v364_v46  ;;  %v486_v14 = vsub.s32 %v483_v9, %v1421_v11  ;;  %v690_v11 = vld [vmem:[#allocation3] sm:$0x1] }
  0xe5   : > { %v420_v54 = vrot.slane %v406_v48, %v1434_v22  ;;  %v425_v55 = vcombine.low %v368_v47, %v372_v49  ;;  %v432_v56 = vrot.slane %v422_v50, %v1434_v22  ;;  %v439_v57 = vrot.slane %v423_v51, %v1434_v22 }
  0xe6   : > { %v446_v58 = vrot.slane %v424_v53, %v1434_v22  ;;  %v691_v25 = vand.u32 2147483647, %v690_v11  ;;  %vm695_vm4 = vcmp.ge.f32.partialorder %v690_v11, 0.0 }
  0xe7   : > { %v421_v59 = vcombine.low %v413_v52, %v420_v54  ;;  %v453_v60 = vrot.slane %v425_v55, %v1434_v22  ;;  %v454_v61 = vcombine.low %v432_v56, %v439_v57 }
  0xe8   : > { %v692_v26 = vsub.f32 0.0, %v691_v25 }
  0xe9   : > { %472 = vperm.xlu1 %1057, %v421_v59   ;;  %v455_v63 = vcombine.low %v446_v58, %v453_v60  ;;  %v462_v0 = vrot.slane %v454_v61, %v1434_v22 }
  0xea   : > { %v693_v27 = vmul.f32 1.442695, %v692_v26 }
  0xeb   : > { %v469_v1 = vrot.slane %v455_v63, %v1434_v22 }
  0xec   : > { %1059 = vpow2.f32 %v693_v27 }
  0xed   : > { %v470_v2 = vcombine.low %v462_v0, %v469_v1 }
  0xef   : > { %475 = vperm.xlu1 %1057, %v470_v2  }
 0x164   : > { %v473_v10 = vpop.permute.xlu1 %472 }
 0x165   : > { %v482_v16 = vrot.slane %v473_v10, %v481_v12 }
 0x16a   : > { %v476_v15 = vpop.permute.xlu1 %475 }
 0x16b   : > { %v487_v17 = vrot.slane %v476_v15, %v486_v14 }
 0x16d   : > { %v489_v18 = vsel %vm488_vm2, %v487_v17, %v482_v16 }
 0x16e   : > { %v496_v19 = vrot.slane %v489_v18, %v1434_v22 }
 0x170   : > { %v503_v21 = vrot.slane %v496_v19, %v1434_v22  ;;  %v1060_v22 = vpop.eup %1059 }
 0x171   : > { %v696_v28 = vadd.f32 1.0, %v1060_v22 }
 0x172   : > { %v505_v23 = vadd.f32 %v503_v21, %v300_v20 }
 0x173   : > { %1061 = vrcp.f32 %v696_v28 }
 0x174   : > { %507 = vst.msk [vmem:[#allocation2] sm:$0x1] %vm294_vm0, %v505_v23 }
 0x17b   : > { %v511_v8 = vld [vmem:[#allocation2] sm:$0x1] }
 0x17c   : > { %v512_v24 = vmul.f32 0.00390625, %v511_v8 }
 0x17e   : > { %950 = vmatmul.mubr.msk.f32.vlgmr.msra.gmra.mxu0 %vm515_vm3, %v512_v24  ;;  %957 = vmatmul.mubr.msk.f32.vlgmr.msra.gmra.mxu1 %vm515_vm3, %v512_v24 }
 0x17f   : > { %960 = vmatpush3.msra.mxu0 %v514_v3  ;;  %963 = vmatprep.mubr.msk.f32.mxu0 %vm1251_vm1, %v1250_v62 }
 0x180   : > { %961 = vmatprep.subr.mxu0 %v1250_v62  ;;  %v1062_v37 = vpop.eup %1061 }
 0x181   : > { %962 = vmatpush3.msra.mxu0 %v513_v5  ;;  %v699_v38 = vmul.f32 %v1062_v37, %v1060_v22 }
 0x183   : > { %v700_v39 = vsel %vm695_vm4, %v1062_v37, %v699_v38 }
 0x184   : > { %v711_v40 = vsub.f32 1.0, %v700_v39 }
 0x23e   : > { %v585_v30 = vpop.f32.mrf.mxu0  ;;  %v658_v31 = vpop.f32.mrf.mxu1 }
 0x23f   : > { %v659_v32 = vadd.f32 %v658_v31, %v591_v29  ;;  %v662_v33 = vsel %vm294_vm0, %v585_v30, 0.0 }
 0x240   : > { %v958_v34 = vpop.f32.mrf.mxu1  ;;  %663 = vadd.xlane.f32.xlu0 %v662_v33  ;;  %v951_v35 = vpop.f32.mrf.mxu0 }
 0x241   : > { %v665_v36 = vsel %vm294_vm0, %v659_v32, 0.0 }
 0x242   : > { %666 = vadd.xlane.f32.xlu1 %v665_v36 }
 0x253   : > { %714 = vperm.xlu1 %1057, %v711_v40  }
 0x256   : > { %703 = vperm.xlu0 %1058, %v700_v39  }
 0x2c9   : > { %v664_v41 = vpop.xlane.xlu0 %663 }
 0x2ca   : > { %v668_v42 = vmul.f32 %v664_v41, %v659_v32 }
 0x2cb   : > { %v667_v43 = vpop.xlane.xlu1 %666 }
 0x2cc   : > { %v669_v44 = vand.u32 2147483647, %v668_v42  ;;  %v679_v45 = vmul.f32 %v667_v43, %v585_v30  ;;  %vm673_vm5 = vcmp.ge.f32.partialorder %v668_v42, 0.0 }
 0x2ce   : > { %v670_v46 = vsub.f32 0.0, %v669_v44  ;;  %v680_v47 = vand.u32 2147483647, %v679_v45  ;;  %vm684_vm6 = vcmp.ge.f32.partialorder %v679_v45, 0.0 }
 0x2cf   : > { %v715_v57 = vpop.permute.xlu1 %714 }
 0x2d0   : > { %v671_v48 = vmul.f32 1.442695, %v670_v46  ;;  %v681_v49 = vsub.f32 0.0, %v680_v47  ;;  %v720_v63 = vrot.slane %v715_v57, %v1424_v13 }
 0x2d1   : > { %v704_v55 = vpop.permute.xlu0 %703 }
 0x2d2   : > { %1063 = vpow2.f32 %v671_v48  ;;  %v682_v50 = vmul.f32 1.442695, %v681_v49  ;;  %v709_v60 = vrot.slane %v704_v55, %v1424_v13 }
 0x2d4   : > { %1065 = vpow2.f32 %v682_v50 }
 0x2df   : > { %v1064_v51 = vpop.eup %1063 }
 0x2e0   : > { %v674_v52 = vadd.f32 1.0, %v1064_v51 }
 0x2e1   : > { %v1066_v53 = vpop.eup %1065 }
 0x2e2   : > { %1067 = vrcp.f32 %v674_v52  ;;  %v685_v54 = vadd.f32 1.0, %v1066_v53 }
 0x2e4   : > { %1069 = vrcp.f32 %v685_v54 }
 0x2ef   : > { %v1068_v56 = vpop.eup %1067 }
 0x2f0   : > { %v677_v58 = vmul.f32 %v1068_v56, %v1064_v51 }
 0x2f1   : > { %v1070_v59 = vpop.eup %1069 }
 0x2f2   : > { %v688_v61 = vmul.f32 %v1070_v59, %v1066_v53  ;;  %v678_v62 = vsel %vm673_vm5, %v1068_v56, %v677_v58 }
 0x2f3   : > { %v710_v2 = vmul.f32 %v709_v60, %v678_v62 }
 0x2f4   : > { %v689_v0 = vsel %vm684_vm6, %v1070_v59, %v688_v61 }
 0x2f5   : > { %v721_v1 = vmul.f32 %v720_v63, %v689_v0 }
 0x2f7   : > { %v722_v3 = vadd.f32 %v721_v1, %v710_v2 }
 0x2f9   : > { %964 = vmatmul.mubr.msk.f32.vlgmr.msra.gmra.mxu0 %vm515_vm3, %v722_v3 }
 0x3b9   : > { %v792_v4 = vpop.f32.mrf.mxu0 }
 0x3ba   : > { %v796_v5 = vand.u32 2147483647, %v792_v4  ;;  %vm800_vm7 = vcmp.ge.f32.partialorder %v792_v4, 0.0 }
 0x3bb   : > { %v965_v6 = vpop.f32.mrf.mxu0 }
 0x3bc   : > { %v797_v7 = vsub.f32 0.0, %v796_v5 }
 0x3be   : > { %v798_v9 = vmul.f32 1.442695, %v797_v7 }
 0x3c0   : > { %1071 = vpow2.f32 %v798_v9 }
 0x3cd   : > { %v1072_v10 = vpop.eup %1071 }
 0x3ce   : > { %v801_v12 = vadd.f32 1.0, %v1072_v10 }
 0x3d0   : > { %1073 = vrcp.f32 %v801_v12 }
 0x3dd   : > { %v1074_v13 = vpop.eup %1073 }
 0x3de   : > { %v804_v14 = vmul.f32 %v1074_v13, %v1072_v10 }
 0x3e0   : > { %v805_v15 = vsel %vm800_vm7, %v1074_v13, %v804_v14 }
 0x3e1   : > { %806 = vst.msk [vmem:[%s288_s15] sm:$0x1] %vm294_vm0, %v805_v15 }
 0x3e2   : > { %1168 = shalt.err (!%p1165_p5)
}
 0x3e3   : > { %s1169_s14 = scalar_lea.hbm %s1475_s26, 16  ;;  %s1173_s19 = scalar_lea.hbm %s1523_s5, 32 }
 0x3e4   : > { %p1170_p10 = scmp.ne.s32.totalorder %s1475_s26, %s1169_s14  ;;  %p1174_p6 = scmp.lt.s32.totalorder %s1475_s26, %s1523_s5 }
 0x3e5   : > { %p1175_p12 = scmp.lt.s32.totalorder %s1173_s19, %s1169_s14 }
 0x3e6   : > { %p1171_p1 = pnand %p1170_p10, %p1381_p7 }
 0x3e7   : > { %p1176_p3 = por %p1175_p12, %p1174_p6 }
 0x3e8   : > { %p1172_p4 = pneg %p1171_p1 }
 0x3ea   : > { %p1177_p8 = pnand %p1176_p3, %p1172_p4 }
 0x3ec   : > { %1180 = shalt.err (!%p1177_p8)
}
 0x3ed   : > { %976 = dma.vmem_to_hbm [thread:$0]  (%p1381_p7), %s821_s17, 16, %s1475_s26, %s808_s8  }
 0x3ee PF: > { %s832_s6 = sand.u32 1, %s1219_s20   ;;  %p1537_p9 = scmp.ne.s32.totalorder %s1530_s30, 0 }
 0x3ef   : > { %p1538_p11 = scmp.ge.s32.totalorder %s1239_s25, 2  ;;  %s833_s15 = scalar_lea.sflag [#allocation6], %s832_s6 }
 0x3f1   : > { %p990_p2 = pnand %p1538_p11, %p1537_p9 }
 0x3f3   : > { %p991_p13 = pneg %p990_p2 }
 0x3f5   : > { %1214 = dma.done.wait (%p991_p13), %s833_s15, 16  }
 0x3f6   : > { %1216 = vsyncadd (%p991_p13), %s833_s15, 4294967280  ;;  %s24_s25 = sadd.s32 1, %s1239_s25   ;;  %s1539_s20 = smov %s1223_s21 }
 0x3f7   : > { %p21_p0 = scmp.ge.s32.totalorder %s24_s25, 4   ;;  %s1540_s21 = smov %s1227_s22 }
 0x3f8   : > { %s1541_s22 = smov %s1390_s12  ;;  %s1542_s23 = smov %s1235_s24 }
 0x3f9   : > { %s1543_s24 = smov %s1545_s4  ;;  %23 = sbr.rel (!%p21_p0) target bundleno = 10 (0xa), region = 101 }
 0x3fe   :  { %837 = vsyncpa [#allocation5], 1 }
 0x3ff   :  { %839 = vsyncpa [#allocation5 + $0x1], 1 }
 0x400   :  { %840 = vsyncpa [#allocation8], 1 }
 0x401   :  { %841 = vsyncpa [#allocation6], 1 }
 0x402   :  { %843 = vsyncpa [#allocation6 + $0x1], 1 }

</bundles_post_ra>
